<compile_context>
chip_gen: v7x
topology: tpu7x:2x2x1
jax: 0.10.0
libtpu: 0.0.40
codegen_flags: <defaults>
</compile_context>

<pallas_src>
import functools

import jax
import jax.numpy as jnp
from jax import lax
from jax.experimental import pallas as pl
from jax.experimental.pallas import tpu as pltpu

WIDTH = 32
NUM_CLASSES = 10
NUM_CHANNELS = 3
IMG = 32
BN_EPS = 1e-5

F_CH = 128                       # padded channel width (lane-dense)
FEAT = 36 * WIDTH                # 1152 = 9 * 128

W32 = 32                         # row stride of the 32x32 stage buffer
PB32_ROWS = (IMG + 2) * W32      # 1088 (one zero halo row above / below)
M32 = IMG * W32                  # 1024 output rows
TM32 = 256                       # M tile -> (256,128) f32 accumulator = 32 vregs

H10 = 10
W10 = 16                         # 10x10 stage kept in a padded width of 16
PB10_ROWS = (H10 + 2) * W10      # 192
M10 = H10 * W10                  # 160

# (Cin, Cout) of the 8 conv blocks (duplicate 'conv6' key collapses, last wins).
_CONV_CFG = [
    (NUM_CHANNELS, 1 * WIDTH),
    (1 * WIDTH, 2 * WIDTH),
    (2 * WIDTH, 2 * WIDTH),
    (2 * WIDTH, 4 * WIDTH),
    (4 * WIDTH, 4 * WIDTH),
    (4 * WIDTH, 4 * WIDTH),
    (4 * WIDTH, 4 * WIDTH),
    (4 * WIDTH, 4 * WIDTH),
]

# ---------------------------------------------------------------------------
# Tiny probe: determine pltpu.roll's rotation convention once (robustness).
# ---------------------------------------------------------------------------
_ROLL_JNP = None


def _roll_probe_kernel(x_ref, o_ref):
    o_ref[...] = pltpu.roll(x_ref[...], 1, 0)


def _detect_roll_convention():
    """Sets _ROLL_JNP = True if pltpu.roll matches jnp.roll semantics."""
    global _ROLL_JNP
    if _ROLL_JNP is not None:
        return _ROLL_JNP
    x = jnp.broadcast_to(jnp.arange(16, dtype=jnp.float32)[:, None], (16, 128))
    y = pl.pallas_call(
        _roll_probe_kernel,
        out_shape=jax.ShapeDtypeStruct((16, 128), jnp.float32))(x)
    _ROLL_JNP = bool(jax.device_get(y)[1, 0] == 0.0)
    return _ROLL_JNP


# ---------------------------------------------------------------------------
# The fused forward kernel (one batch item per grid step)
# ---------------------------------------------------------------------------
def _fused_kernel(x0_ref, eps_ref, w0_ref, wconv_ref, bconv_ref,
                  maskl_ref, maskr_ref, mask10_ref, sel0_ref, sel1_ref,
                  we_ref, be_ref, wd_ref, bd_ref, wl_ref, bl_ref,
                  logits_ref, feat_ref,
                  pb32_ref, cc32_ref, pb10_ref, cc10_ref,
                  *, K, roll_jnp):
    f32, bf16 = jnp.float32, jnp.bfloat16

    def shift(v, d):
        # out[i] = v[(i + d) % n] along axis 0 (XLU rotate; wrap lands on halos).
        n = v.shape[0]
        amt = ((n - d) % n) if roll_jnp else (d % n)
        return pltpu.roll(v, amt, 0)

    # Scratch is uninitialised: zero halo rows every step (cheap, keeps steps
    # independent so the batch grid axis can run "parallel" on 2-TC chips).
    pb32_ref[0:W32, :] = jnp.zeros((W32, F_CH), f32)
    pb32_ref[PB32_ROWS - W32:PB32_ROWS, :] = jnp.zeros((W32, F_CH), f32)
    pb10_ref[0:W10, :] = jnp.zeros((W10, F_CH), f32)
    pb10_ref[PB10_ROWS - W10:PB10_ROWS, :] = jnp.zeros((W10, F_CH), f32)

    # ---- conv0 (+BN+ReLU): pre-im2col'd input, one K=32 dot per 256-row tile ----
    for m0 in range(0, M32, TM32):
        acc = jnp.dot(x0_ref[0, m0:m0 + TM32, :], w0_ref[...],
                      preferred_element_type=f32)
        pb32_ref[W32 + m0:W32 + m0 + TM32, :] = jnp.maximum(
            acc + bconv_ref[0, :], 0.0)

    # ---- conv1..conv5 (+BN+ReLU) on the 32x32 stage ------------------------------
    def conv32(li):
        pbv = pb32_ref[...]                                        # (1088,128) f32
        cc32_ref[:, 0:F_CH] = (shift(pbv, -1) * maskl_ref[...]).astype(bf16)
        cc32_ref[:, F_CH:2 * F_CH] = pbv.astype(bf16)
        cc32_ref[:, 2 * F_CH:3 * F_CH] = (shift(pbv, 1) * maskr_ref[...]).astype(bf16)
        wk = [wconv_ref[li - 1, kh] for kh in range(3)]            # (384,128) bf16
        for m0 in range(0, M32, TM32):
            acc = jnp.zeros((TM32, F_CH), f32)
            for kh in range(3):
                acc = acc + jnp.dot(
                    cc32_ref[kh * W32 + m0:kh * W32 + m0 + TM32, :], wk[kh],
                    preferred_element_type=f32)
            pb32_ref[W32 + m0:W32 + m0 + TM32, :] = jnp.maximum(
                acc + bconv_ref[li, :], 0.0)

    for li in range(1, 6):
        conv32(li)

    # ---- pool0: MaxPool2d(3) 32x32 -> 10x10 (fused, VMEM resident) ---------------
    v3 = pb32_ref[W32:W32 + 30 * W32, :].reshape(10, 3 * W32, F_CH)
    vy = jnp.maximum(jnp.maximum(v3[:, 0:W32, :], v3[:, W32:2 * W32, :]),
                     v3[:, 2 * W32:3 * W32, :])
    vyf = vy.reshape(10 * W32, F_CH)
    vx = jnp.maximum(jnp.maximum(vyf, shift(vyf, 1)), shift(vyf, 2))
    pooled = jnp.dot(sel0_ref[...], vx.astype(bf16), preferred_element_type=f32)
    pb10_ref[W10:W10 + M10, :] = pooled                            # (160,128)

    # ---- conv6, conv7 (+BN+ReLU) on the 10x10 stage (padded Wq=16 layout) --------
    def conv10(li):
        pbv = pb10_ref[...]                                        # (192,128) f32
        cc10_ref[:, 0:F_CH] = shift(pbv, -1).astype(bf16)
        cc10_ref[:, F_CH:2 * F_CH] = pbv.astype(bf16)
        cc10_ref[:, 2 * F_CH:3 * F_CH] = shift(pbv, 1).astype(bf16)
        acc = jnp.zeros((M10, F_CH), f32)
        for kh in range(3):
            acc = acc + jnp.dot(cc10_ref[kh * W10:kh * W10 + M10, :],
                                wconv_ref[li - 1, kh],
                                preferred_element_type=f32)
        z = jnp.maximum(acc + bconv_ref[li, :], 0.0) * mask10_ref[...]
        pb10_ref[W10:W10 + M10, :] = z

    conv10(6)
    conv10(7)

    # ---- pool1: MaxPool2d(3) 10x10 -> 3x3 ----------------------------------------
    u3 = pb10_ref[W10:W10 + 9 * W10, :].reshape(3, 3 * W10, F_CH)
    uy = jnp.maximum(jnp.maximum(u3[:, 0:W10, :], u3[:, W10:2 * W10, :]),
                     u3[:, 2 * W10:3 * W10, :])
    uyf = uy.reshape(3 * W10, F_CH)
    ux = jnp.maximum(jnp.maximum(uyf, shift(uyf, 1)), shift(uyf, 2))
    hid = jnp.dot(sel1_ref[...], ux.astype(bf16), preferred_element_type=f32)  # (9,128)

    # ---- VariationalBottleneck (enc -> reparameterize -> dec) + final Linear -----
    hid_b = hid.astype(bf16)
    stats = jnp.zeros((1, 2 * K), f32)
    for p in range(9):
        stats = stats + jnp.dot(hid_b[p:p + 1, :], we_ref[p],
                                preferred_element_type=f32)
    stats = stats + be_ref[...]
    mu = stats[:, :K]
    std = jnp.exp(0.5 * stats[:, K:])                              # EUP
    zvb = mu + std * eps_ref[0]
    feat = jnp.dot(zvb.astype(bf16), wd_ref[...],
                   preferred_element_type=f32) + bd_ref[...]       # (1, 1152)
    feat_ref[0] = feat
    logits_ref[0] = jnp.dot(feat.astype(bf16), wl_ref[...],
                            preferred_element_type=f32) + bl_ref[...]


# ---------------------------------------------------------------------------
# Wrapper: im2col staging for conv0 (tiny), one pallas_call for everything.
# ---------------------------------------------------------------------------
def convnet_precode_forward(packed, x, eps):
    x0, x1 = x
    B = x0.shape[0]
    K = eps.shape[-1]
    roll_jnp = _ROLL_JNP if _ROLL_JNP is not None else True

    img = jnp.transpose(x0.reshape(B, NUM_CHANNELS, IMG, IMG), (0, 2, 3, 1))
    xp = jnp.pad(img, ((0, 0), (1, 1), (1, 1), (0, 0)))
    cols = [xp[:, kh:kh + IMG, kw:kw + IMG, :]
            for kh in range(3) for kw in range(3)]
    x0col = jnp.concatenate(cols, axis=-1).reshape(B, M32, 27)
    x0col = jnp.pad(x0col, ((0, 0), (0, 0), (0, 5))).astype(jnp.bfloat16)
    eps3 = eps.reshape(B, 1, K).astype(jnp.float32)

    def cspec(shape):
        zeros = (0,) * len(shape)
        return pl.BlockSpec(shape, lambda b, _z=zeros: _z)

    kernel = functools.partial(_fused_kernel, K=K, roll_jnp=roll_jnp)
    logits3, feat3 = pl.pallas_call(
        kernel,
        out_shape=(jax.ShapeDtypeStruct((B, 1, NUM_CLASSES), jnp.float32),
                   jax.ShapeDtypeStruct((B, 1, FEAT), jnp.float32)),
        grid=(B,),
        in_specs=[
            pl.BlockSpec((1, M32, 32), lambda b: (b, 0, 0)),
            pl.BlockSpec((1, 1, K), lambda b: (b, 0, 0)),
            cspec((32, F_CH)),
            cspec((7, 3, 3 * F_CH, F_CH)),
            cspec((8, F_CH)),
            cspec((PB32_ROWS, 1)),
            cspec((PB32_ROWS, 1)),
            cspec((M10, 1)),
            cspec((M10, 10 * W32)),
            cspec((9, 3 * W10)),
            cspec((9, F_CH, 2 * K)),
            cspec((1, 2 * K)),
            cspec((K, FEAT)),
            cspec((1, FEAT)),
            cspec((FEAT, NUM_CLASSES)),
            cspec((1, NUM_CLASSES)),
        ],
        out_specs=(pl.BlockSpec((1, 1, NUM_CLASSES), lambda b: (b, 0, 0)),
                   pl.BlockSpec((1, 1, FEAT), lambda b: (b, 0, 0))),
        scratch_shapes=[
            pltpu.VMEM((PB32_ROWS, F_CH), jnp.float32),
            pltpu.VMEM((PB32_ROWS, 3 * F_CH), jnp.bfloat16),
            pltpu.VMEM((PB10_ROWS, F_CH), jnp.float32),
            pltpu.VMEM((PB10_ROWS, 3 * F_CH), jnp.bfloat16),
        ],
        compiler_params=pltpu.CompilerParams(
            dimension_semantics=("parallel",),
            vmem_limit_bytes=48 * 1024 * 1024),
    )(x0col, eps3,
      packed["w0"], packed["wconv"], packed["bconv"],
      packed["maskl"], packed["maskr"], packed["mask10"],
      packed["sel0"], packed["sel1"],
      packed["we"], packed["be"], packed["wd"], packed["bd"],
      packed["wl"], packed["bl"])
    return logits3[:, 0, :], feat3[:, 0, :], x1


# ---------------------------------------------------------------------------
# One-time parameter packing: BN fold, channel padding to 128, (kh, 3*Cin, Cout)
# matmul layout, encoder-row permutation, edge masks, pooling selection matrices.
# ---------------------------------------------------------------------------
def prepack_params(p, K):
    assert 4 * WIDTH == F_CH and FEAT == 9 * F_CH
    packed = {}
    wconv_list, bconv_rows = [], []
    for i, (cin, cout) in enumerate(_CONV_CFG):
        w, b = p[f"conv{i}_w"], p[f"conv{i}_b"]
        s = p[f"bn{i}_gamma"] / jnp.sqrt(p[f"bn{i}_var"] + BN_EPS)
        w_fold = w * s[:, None, None, None]
        b_fold = (b - p[f"bn{i}_mean"]) * s + p[f"bn{i}_beta"]
        bconv_rows.append(jnp.zeros((F_CH,), jnp.float32).at[:cout].set(b_fold))
        wt = jnp.transpose(w_fold, (2, 3, 1, 0))                  # (3,3,cin,cout)
        if i == 0:
            w0 = jnp.zeros((32, F_CH), jnp.float32).at[:27, :cout].set(
                wt.reshape(27, cout))
            packed["w0"] = w0.astype(jnp.bfloat16)
        else:
            wp = jnp.zeros((3, 3, F_CH, F_CH), jnp.float32)
            wp = wp.at[:, :, :cin, :cout].set(wt)
            wconv_list.append(wp.reshape(3, 3 * F_CH, F_CH))
    packed["wconv"] = jnp.stack(wconv_list, 0).astype(jnp.bfloat16)  # (7,3,384,128)
    packed["bconv"] = jnp.stack(bconv_rows, 0)                       # (8,128) f32

    # Encoder rows permuted from torch (c,h,w)-flat to the kernel's (h*3+w, c)
    # ordering so no activation permute sits on the critical path.
    we = jnp.transpose(p["enc_w"].reshape(2 * K, F_CH, 9), (2, 1, 0))
    packed["we"] = we.astype(jnp.bfloat16)                           # (9,128,2K)
    packed["be"] = p["enc_b"].reshape(1, 2 * K).astype(jnp.float32)
    packed["wd"] = p["dec_w"].T.astype(jnp.bfloat16)                 # (K,1152)
    packed["bd"] = p["dec_b"].reshape(1, FEAT).astype(jnp.float32)
    packed["wl"] = p["fc_w"].T.astype(jnp.bfloat16)                  # (1152,10)
    packed["bl"] = p["fc_b"].reshape(1, NUM_CLASSES).astype(jnp.float32)

    ridx = jnp.arange(PB32_ROWS)
    packed["maskl"] = (ridx % W32 != 0).astype(jnp.bfloat16).reshape(-1, 1)
    packed["maskr"] = (ridx % W32 != W32 - 1).astype(jnp.bfloat16).reshape(-1, 1)
    packed["mask10"] = ((jnp.arange(M10) % W10) < 10).astype(
        jnp.bfloat16).reshape(-1, 1)

    r = jnp.arange(M10)
    col = (r // W10) * W32 + 3 * (r % W10)
    sel0 = (jnp.arange(10 * W32)[None, :] == col[:, None]) & ((r % W10) < 10)[:, None]
    packed["sel0"] = sel0.astype(jnp.bfloat16)                       # (160,320)
    r1 = jnp.arange(9)
    col1 = (r1 // 3) * W10 + 3 * (r1 % 3)
    sel1 = jnp.arange(3 * W10)[None, :] == col1[:, None]
    packed["sel1"] = sel1.astype(jnp.bfloat16)                       # (9,48)
    return packed


# ---------------------------------------------------------------------------
# Pure-JAX f32 reference (inference-mode BN) for a loose numerical check.
# ---------------------------------------------------------------------------
def reference_forward(params, x0, eps, K):
    B = x0.shape[0]
    h = x0.reshape(B, NUM_CHANNELS, IMG, IMG)
    for i, _ in enumerate(_CONV_CFG):
        h = lax.conv_general_dilated(
            h, params[f"conv{i}_w"], (1, 1), ((1, 1), (1, 1)),
            dimension_numbers=("NCHW", "OIHW", "NCHW"))
        h = h + params[f"conv{i}_b"][None, :, None, None]
        s = params[f"bn{i}_gamma"] / jnp.sqrt(params[f"bn{i}_var"] + BN_EPS)
        h = (h - params[f"bn{i}_mean"][None, :, None, None]) * s[None, :, None, None] \
            + params[f"bn{i}_beta"][None, :, None, None]
        h = jnp.maximum(h, 0.0)
        if i in (5, 7):
            h = lax.reduce_window(h, -jnp.inf, lax.max,
                                  (1, 1, 3, 3), (1, 1, 3, 3), "VALID")
    hidden = h.reshape(B, -1)
    stats = hidden @ params["enc_w"].T + params["enc_b"]
    mu, log_var = stats[:, :K], stats[:, K:]
    z = mu + jnp.exp(0.5 * log_var) * eps
    feat = z @ params["dec_w"].T + params["dec_b"]
    logits = feat @ params["fc_w"].T + params["fc_b"]
    return logits, feat


# ---------------------------------------------------------------------------
# Deterministic synthetic parameters (torch-layout shapes)
# ---------------------------------------------------------------------------
def init_params(key, K):
    params = {}
    keys = iter(jax.random.split(key, 64))

    def nrm(shape, scale):
        return scale * jax.random.normal(next(keys), shape, jnp.float32)

    for i, (cin, cout) in enumerate(_CONV_CFG):
        params[f"conv{i}_w"] = nrm((cout, cin, 3, 3), (2.0 / (cin * 9)) ** 0.5)
        params[f"conv{i}_b"] = nrm((cout,), 0.02)
        params[f"bn{i}_gamma"] = 1.0 + nrm((cout,), 0.05)
        params[f"bn{i}_beta"] = nrm((cout,), 0.02)
        params[f"bn{i}_mean"] = nrm((cout,), 0.02)
        params[f"bn{i}_var"] = 1.0 + 0.1 * jax.random.uniform(
            next(keys), (cout,), jnp.float32)
    params["enc_w"] = nrm((2 * K, FEAT), (0.25 / FEAT) ** 0.5)
    params["enc_b"] = nrm((2 * K,), 0.01)
    params["dec_w"] = nrm((FEAT, K), (1.0 / K) ** 0.5)
    params["dec_b"] = nrm((FEAT,), 0.01)
    params["fc_w"] = nrm((NUM_CLASSES, FEAT), (1.0 / FEAT) ** 0.5)
    params["fc_b"] = nrm((NUM_CLASSES,), 0.01)
    return params


if __name__ == "__main__":
    K = 128                                  # VariationalBottleneck hidden_size
    key = jax.random.PRNGKey(0)
    kp, kx, ke = jax.random.split(key, 3)
    params = init_params(kp, K)
    _detect_roll_convention()                # tiny probe kernel, run once
    packed = prepack_params(params, K)       # one-time weight packing

    B = 2
    x0 = jax.random.uniform(kx, (B, NUM_CHANNELS * IMG * IMG), jnp.float32)
    x1 = jnp.arange(B, dtype=jnp.int32)      # labels, passed through
    eps = jax.random.normal(ke, (B, K), jnp.float32)   # VB reparam noise

    fwd = jax.jit(lambda pk, a, b, e: convnet_precode_forward(pk, (a, b), e))
    logits, feature, labels = fwd(packed, x0, x1, eps)
    jax.block_until_ready((logits, feature, labels))

    assert logits.shape == (B, NUM_CLASSES)
    assert feature.shape == (B, FEAT)
    assert labels.shape == (B,)
    assert bool(jnp.all(jnp.isfinite(logits)))
    assert bool(jnp.all(jnp.isfinite(feature)))

    # Loose numerical check vs a pure-JAX f32 reference (kernel runs bf16 MXU).
    ref_logits, ref_feat = jax.jit(
        functools.partial(reference_forward, K=K))(params, x0, eps)
    jax.block_until_ready((ref_logits, ref_feat))
    assert float(jnp.max(jnp.abs(logits - ref_logits))) < 0.7
    assert float(jnp.max(jnp.abs(feature - ref_feat))) < 0.7

    print("KERNEL_OK")
</pallas_src>

<mosaic_0001>
module attributes {stable_mosaic.version = 11 : i64} {
  func.func @_roll_probe_kernel(%arg0: memref<16x128xf32, #tpu.memory_space<vmem>>, %arg1: memref<16x128xf32, #tpu.memory_space<vmem>>) attributes {dimension_semantics = [], scalar_prefetch = 0 : i64, scratch_operands = 0 : i64, tpu.core_type = #tpu.core_type<tc>} {
    %c0 = arith.constant 0 : index
    %c0_0 = arith.constant 0 : index
    %0 = vector.load %arg0[%c0, %c0_0] : memref<16x128xf32, #tpu.memory_space<vmem>>, vector<16x128xf32>
    %c1_i32 = arith.constant 1 : i32
    %1 = tpu.dynamic_rotate %0 by %c1_i32 dim 0 : vector<16x128xf32>, i32 -> vector<16x128xf32>
    %c0_1 = arith.constant 0 : index
    %c0_2 = arith.constant 0 : index
    %2 = vector.load %arg1[%c0_1, %c0_2] : memref<16x128xf32, #tpu.memory_space<vmem>>, vector<16x128xf32>
    tpu.vector_store %arg1[%c0_1, %c0_2], %1 {strides = array<i32>} : memref<16x128xf32, #tpu.memory_space<vmem>>, vector<16x128xf32>,
    return
  }
}

</mosaic_0001>

<bundles_post_ra>
// kernel: tpu_custom_call.1
= control target key start
LH: loop header
LB: loop body
LE: loop exit
PB: predicated region body
PF: predicated region fallthrough
CT: control target
= control target key end

     0   :  { %6 = vsyncpa [#allocation3], 0  ;;  %s147_s0 = inlined_call_operand.hbm [shape: f32[16,128], index: 0, kind: input, shape index: {}]   ;;  %s148_s1 = inlined_call_operand.hbm [shape: f32[16,128], index: 1, kind: output, shape index: {}]  }
   0x1   :  { %7 = vsyncpa [#allocation4], 0  ;;  %s103_s6 = smov [#allocation2]   ;;  %s55_s10 = scalar_lea.hbm %s147_s0, 256 }
   0x2   :  { %s13_s7 = sshll.u32 %s103_s6, 4  ;;  %p56_p0 = scmp.ne.s32.totalorder %s147_s0, %s55_s10  ;;  %s14_s7 = int_to_ptr.vmem [resolvable:$true] %s13_s7 }
   0x3   :  { %p59_p1 = scmp.lt.u32.totalorder %s55_s10, %s147_s0 }
   0x5   :  { %p61_p2 = pnand %p59_p1, %p56_p0 }
   0x7   :  { %64 = shalt.err (!%p61_p2)
}
   0x8   :  { %s65_s15 = scalar_lea.vmem %s14_s7, 256  ;;  %p70_p4 = scmp.lt.s32.totalorder %s14_s7, %s14_s7 }
   0x9   :  { %p66_p3 = scmp.ne.s32.totalorder %s14_s7, %s65_s15  ;;  %p71_p5 = scmp.lt.s32.totalorder %s65_s15, %s65_s15 }
   0xb   :  { %p72_p6 = por %p71_p5, %p70_p4 }
   0xd   :  { %p73_p7 = pnand %p72_p6, %p66_p3 }
   0xf   :  { %76 = shalt.err (!%p73_p7)
}
  0x10   :  { %s104_s16 = smov 128   ;;  %s105_s17 = smov 8  }
  0x11   :  { %19 = dma.hbm_to_vmem [thread:$0]  %s147_s0, 256, %s14_s7, [#allocation3], %s104_s16, %s104_s16, %s105_s17  }
  0x12   :  { %99 = dma.done.wait [#allocation3], 256  }
  0x13   :  { %100 = vsyncadd [#allocation3], 4294967040  ;;  %v27_v0 = vlaneseq  ;;  %s106_s20 = smov [#allocation5]   ;;  %v23_v2 = vld [vmem:[#allocation2] sm:$0xff]  ;;  %v24_v3 = vld [vmem:[#allocation2 + $0x8] sm:$0xff] }
  0x14   :  { %s39_s21 = sshll.u32 %s106_s20, 4  ;;  %v25_v4 = vrot.slane %v23_v2, 7  ;;  %v26_v5 = vrot.slane %v24_v3, 7  ;;  %s40_s21 = int_to_ptr.vmem [resolvable:$true] %s39_s21 }
  0x15   :  { %v28_v1 = vshrl.u32 %v27_v0, 7  ;;  %s77_s22 = scalar_lea.vmem %s40_s21, 256  ;;  %p82_p9 = scmp.lt.s32.totalorder %s40_s21, %s40_s21 }
  0x16   :  { %p78_p8 = scmp.ne.s32.totalorder %s40_s21, %s77_s22  ;;  %p83_p10 = scmp.lt.s32.totalorder %s77_s22, %s77_s22 }
  0x17   :  { %vm29_vm0 = vcmp.lt.s32.totalorder %v28_v1, 1 }
  0x18   :  { %v31_v6 = vsel %vm29_vm0, %v26_v5, %v25_v4  ;;  %v30_v7 = vsel %vm29_vm0, %v25_v4, %v26_v5  ;;  %p84_p11 = por %p83_p10, %p82_p9 }
  0x19   :  { %32 = vst [vmem:[#allocation5] sm:$0xff] %v31_v6  ;;  %33 = vst [vmem:[#allocation5 + $0x8] sm:$0xff] %v30_v7 }
  0x1a   :  { %p85_p12 = pnand %p84_p11, %p78_p8 }
  0x1c   :  { %88 = shalt.err (!%p85_p12)
}
  0x1d   :  { %s89_s24 = scalar_lea.hbm %s148_s1, 256 }
  0x1e   :  { %p90_p13 = scmp.ne.s32.totalorder %s148_s1, %s89_s24  ;;  %p93_p0 = scmp.lt.u32.totalorder %s89_s24, %s148_s1 }
  0x20   :  { %p95_p1 = pnand %p93_p0, %p90_p13 }
  0x22   :  { %98 = shalt.err (!%p95_p1)
}
  0x23   :  { %45 = dma.vmem_to_hbm [thread:$0]  %s40_s21, 256, %s148_s1, [#allocation4], %s104_s16, %s104_s16, %s105_s17  }
  0x24   :  { %101 = dma.done.wait [#allocation4], 256  }
  0x25   :  { %102 = vsyncadd [#allocation4], 4294967040 }
  0x26   :  { %49 = vsyncpa [#allocation3], 1 }
  0x27   :  { %50 = vsyncpa [#allocation4], 1 }

</bundles_post_ra>
